<compile_context>
chip_gen: v7x
topology: tpu7x:2x2x1
jax: 0.10.0
libtpu: 0.0.40
codegen_flags: <defaults>
</compile_context>

<pallas_src>
import jax
import jax.numpy as jnp
from jax.experimental import pallas as pl
from jax.experimental.pallas import tpu as pltpu


def conv_relu_kernel(x_ref, w_ref, b_ref, o_ref):
    # x_ref: (tile_m, K_pad)       im2col rows (dy, W, Cin folded into K)
    # w_ref: (K_pad, N_out_pad)    banded weight (dx taps + W-padding folded in)
    # b_ref: (1, N_out_pad)        bias tiled over W
    # o_ref: (tile_m, N_out_pad)   lane-dense output tile
    acc = jnp.dot(x_ref[...], w_ref[...], preferred_element_type=jnp.float32)
    acc = acc + b_ref[...]                                   # broadcast over rows
    o_ref[...] = jnp.maximum(acc, 0.0).astype(o_ref.dtype)   # ReLU, unmasked store


def _round_up(x, m):
    return ((x + m - 1) // m) * m


def _banded_weight(weight_oihw, width):
    """(Cout, Cin, 3, 3) -> (3*W*Cin, W*Cout) banded matmul weight.

    bw[dy*W*Cin + j*Cin + ci, w*Cout + co] = weight[co, ci, dy, j + 1 - w]
    when 0 <= j + 1 - w < 3, else 0.  The "+1" folds the padding=1 halo along W
    into the band so it is never materialized in HBM.
    """
    c_out, c_in, kh, kw = weight_oihw.shape
    w_hwio = jnp.transpose(weight_oihw, (2, 3, 1, 0))            # (3, 3, Cin, Cout)
    j = jnp.arange(width)[:, None]                               # input column
    w = jnp.arange(width)[None, :]                               # output column
    dx = j + 1 - w                                               # tap index
    valid = (dx >= 0) & (dx < kw)
    dx_c = jnp.clip(dx, 0, kw - 1)
    g = w_hwio[:, dx_c, :, :]                                    # (3, W, W, Cin, Cout)
    g = jnp.where(valid[None, :, :, None, None], g, jnp.zeros((), w_hwio.dtype))
    g = jnp.transpose(g, (0, 1, 3, 2, 4))                        # (3, W, Cin, W, Cout)
    return g.reshape(kh * width * c_in, width * c_out)           # (3*W*Cin, W*Cout)


def _pick_tile_m(m, k_pad, n_out_pad, itemsize, budget_bytes=40 * 1024 * 1024):
    """Largest row-tile that divides M and whose pipelined buffers fit the budget."""
    if m % 8 != 0:
        return m
    for cand in (1024, 512, 256, 128, 64, 32, 16, 8):
        if m % cand != 0:
            continue
        need = (2 * cand * k_pad + 2 * cand * n_out_pad
                + 2 * k_pad * n_out_pad + 2 * n_out_pad) * itemsize
        if need <= budget_bytes:
            return cand
    return 8


def conv_relu(x_nchw, weight_oihw, bias, *, tile_m=None, use_bf16=False):
    """Forward pass of ConvRelu.  x_nchw: (N, Cin, H, W) -> (N, Cout, H, W)."""
    n, c_in, h, w = x_nchw.shape
    c_out = weight_oihw.shape[0]

    compute_dtype = jnp.bfloat16 if use_bf16 else x_nchw.dtype
    itemsize = jnp.dtype(compute_dtype).itemsize

    k = 3 * w * c_in
    k_pad = _round_up(max(k, 128), 128)            # full-depth MXU passes
    n_out = w * c_out
    n_out_pad = _round_up(max(n_out, 128), 128)    # lane-dense unmasked stores

    # ---- Layout glue (plain JAX; disappears in an NHWC end-to-end model). ----
    # NCHW -> NHWC, pad H by 1 (W-padding lives in the banded weight), 3-row
    # im2col along H, collapse (N, H) into one big row axis M.
    x_nhwc = jnp.transpose(x_nchw, (0, 2, 3, 1))                 # (N, H, W, Cin)
    x_pad = jnp.pad(x_nhwc, ((0, 0), (1, 1), (0, 0), (0, 0)))    # (N, H+2, W, Cin)
    x_flat = x_pad.reshape(n, h + 2, w * c_in)
    cols = jnp.stack([x_flat[:, dy:dy + h, :] for dy in range(3)], axis=2)
    x_im2col = cols.reshape(n * h, k)                            # (M, 3*W*Cin)
    if k_pad != k:
        x_im2col = jnp.pad(x_im2col, ((0, 0), (0, k_pad - k)))
    x_im2col = x_im2col.astype(compute_dtype)

    w_band = _banded_weight(weight_oihw, w)                      # (3*W*Cin, W*Cout)
    if k_pad != k or n_out_pad != n_out:
        w_band = jnp.pad(w_band, ((0, k_pad - k), (0, n_out_pad - n_out)))
    w_band = w_band.astype(compute_dtype)

    b_tiled = jnp.tile(bias, w)                                  # (W*Cout,)
    if n_out_pad != n_out:
        b_tiled = jnp.pad(b_tiled, (0, n_out_pad - n_out))
    b_tiled = b_tiled.reshape(1, n_out_pad).astype(jnp.float32)

    m = n * h
    if tile_m is None:
        tile_m = _pick_tile_m(m, k_pad, n_out_pad, itemsize)
    assert m % tile_m == 0, "N*H must be divisible by tile_m"
    grid = (m // tile_m,)

    # Explicit scoped-VMEM budget (double-buffered LHS/out/weight + bias + slack).
    need_bytes = (2 * tile_m * k_pad + 2 * tile_m * n_out_pad
                  + 2 * k_pad * n_out_pad + 2 * n_out_pad) * itemsize
    vmem_limit = int(min(64 * 1024 * 1024, max(2 * need_bytes, 32 * 1024 * 1024)))

    cost = pl.CostEstimate(
        flops=2 * m * k_pad * n_out_pad,
        transcendentals=0,
        bytes_accessed=(m * k_pad + k_pad * n_out_pad + m * n_out_pad + n_out_pad)
        * itemsize,
    )

    out_flat = pl.pallas_call(
        conv_relu_kernel,
        out_shape=jax.ShapeDtypeStruct((m, n_out_pad), x_nchw.dtype),
        grid_spec=pltpu.PrefetchScalarGridSpec(
            num_scalar_prefetch=0,
            grid=grid,
            in_specs=[
                pl.BlockSpec((tile_m, k_pad), lambda i: (i, 0)),
                # Grid-invariant operands (constant index_map -> DMA'd once).
                pl.BlockSpec((k_pad, n_out_pad), lambda i: (0, 0)),
                pl.BlockSpec((1, n_out_pad), lambda i: (0, 0)),
            ],
            out_specs=pl.BlockSpec((tile_m, n_out_pad), lambda i: (i, 0)),
        ),
        compiler_params=pltpu.CompilerParams(
            dimension_semantics=("parallel",),
            vmem_limit_bytes=vmem_limit,
        ),
        cost_estimate=cost,
    )(x_im2col, w_band, b_tiled)

    out_nhwc = out_flat[:, :n_out].reshape(n, h, w, c_out)
    return jnp.transpose(out_nhwc, (0, 3, 1, 2))                 # back to NCHW


if __name__ == "__main__":
    key = jax.random.PRNGKey(0)
    k_x, k_w, k_b = jax.random.split(key, 3)

    N, Cin, Cout, H, W = 2, 4, 8, 16, 16

    x = jax.random.normal(k_x, (N, Cin, H, W), dtype=jnp.float32)
    # Deterministic parameter init (PyTorch-like uniform fan-in scaling).
    fan_in = Cin * 3 * 3
    bound = 1.0 / (fan_in ** 0.5)
    weight = jax.random.uniform(
        k_w, (Cout, Cin, 3, 3), minval=-bound, maxval=bound, dtype=jnp.float32
    )
    bias = jax.random.uniform(
        k_b, (Cout,), minval=-bound, maxval=bound, dtype=jnp.float32
    )

    out = conv_relu(x, weight, bias)
    out = jax.block_until_ready(out)

    # Reference check against XLA conv (same semantics as nn.Conv2d + ReLU).
    ref = jax.lax.conv_general_dilated(
        x, weight, window_strides=(1, 1), padding=((1, 1), (1, 1)),
        dimension_numbers=("NCHW", "OIHW", "NCHW"),
    ) + bias[None, :, None, None]
    ref = jnp.maximum(ref, 0.0)

    assert out.shape == (N, Cout, H, W)
    assert jnp.allclose(out, ref, atol=1e-5, rtol=1e-5), float(
        jnp.max(jnp.abs(out - ref))
    )

    print("KERNEL_OK")
</pallas_src>

<mosaic_0001>
module attributes {stable_mosaic.version = 11 : i64} {
  func.func @conv_relu_kernel(%arg0: i32, %arg1: memref<32x256xf32, #tpu.memory_space<vmem>>, %arg2: memref<256x128xf32, #tpu.memory_space<vmem>>, %arg3: memref<1x128xf32, #tpu.memory_space<vmem>>, %arg4: memref<32x128xf32, #tpu.memory_space<vmem>>) attributes {dimension_semantics = [#tpu.dimension_semantics<parallel>], iteration_bounds = array<i64: 1>, scalar_prefetch = 0 : i64, scratch_operands = 0 : i64, tpu.core_type = #tpu.core_type<tc>, window_params = [{transform_indices = @transform_0, window_bounds = array<i64: 32, 256>}, {pipeline_mode = #tpu.pipeline_mode<synchronous>, transform_indices = @transform_1, window_bounds = array<i64: 256, 128>}, {pipeline_mode = #tpu.pipeline_mode<synchronous>, transform_indices = @transform_2, window_bounds = array<i64: 1, 128>}, {transform_indices = @transform_3, window_bounds = array<i64: 32, 128>}]} {
    %c0 = arith.constant 0 : index
    %c0_0 = arith.constant 0 : index
    %0 = vector.load %arg1[%c0, %c0_0] : memref<32x256xf32, #tpu.memory_space<vmem>>, vector<32x256xf32>
    %c0_1 = arith.constant 0 : index
    %c0_2 = arith.constant 0 : index
    %1 = vector.load %arg2[%c0_1, %c0_2] : memref<256x128xf32, #tpu.memory_space<vmem>>, vector<256x128xf32>
    %cst = arith.constant dense<0.000000e+00> : vector<32x128xf32>
    %2 = tpu.matmul %0, %1, %cst {dimension_numbers = #tpu.dot_dimension_numbers<[1], [0], [0], [1], [0, 0, 1, 1], [], []>} : vector<32x256xf32>, vector<256x128xf32>, vector<32x128xf32> -> vector<32x128xf32>
    %c0_3 = arith.constant 0 : index
    %c0_4 = arith.constant 0 : index
    %3 = vector.load %arg3[%c0_3, %c0_4] : memref<1x128xf32, #tpu.memory_space<vmem>>, vector<1x128xf32>
    %4 = vector.broadcast %3 : vector<1x128xf32> to vector<32x128xf32>
    %5 = arith.addf %2, %4 : vector<32x128xf32>
    %cst_5 = arith.constant 0.000000e+00 : f32
    %6 = vector.broadcast %cst_5 : f32 to vector<32x128xf32>
    %7 = arith.maximumf %5, %6 : vector<32x128xf32>
    %c0_6 = arith.constant 0 : index
    %c0_7 = arith.constant 0 : index
    %8 = vector.load %arg4[%c0_6, %c0_7] : memref<32x128xf32, #tpu.memory_space<vmem>>, vector<32x128xf32>
    tpu.vector_store %arg4[%c0_6, %c0_7], %7 {strides = array<i32>} : memref<32x128xf32, #tpu.memory_space<vmem>>, vector<32x128xf32>,
    return
  }
  func.func @transform_0(%arg0: i32) -> (i32, i32) {
    %c0_i32 = arith.constant 0 : i32
    %c0_i32_0 = arith.constant 0 : i32
    return %arg0, %c0_i32 : i32, i32
  }
  func.func @transform_1(%arg0: i32) -> (i32, i32) {
    %c0_i32 = arith.constant 0 : i32
    %c0_i32_0 = arith.constant 0 : i32
    %c0_i32_1 = arith.constant 0 : i32
    return %c0_i32, %c0_i32_0 : i32, i32
  }
  func.func @transform_2(%arg0: i32) -> (i32, i32) {
    %c0_i32 = arith.constant 0 : i32
    %c0_i32_0 = arith.constant 0 : i32
    %c0_i32_1 = arith.constant 0 : i32
    return %c0_i32, %c0_i32_0 : i32, i32
  }
  func.func @transform_3(%arg0: i32) -> (i32, i32) {
    %c0_i32 = arith.constant 0 : i32
    %c0_i32_0 = arith.constant 0 : i32
    return %arg0, %c0_i32 : i32, i32
  }
}

</mosaic_0001>

<bundles_post_ra>
// kernel: tpu_custom_call.1
= control target key start
LH: loop header
LB: loop body
LE: loop exit
PB: predicated region body
PF: predicated region fallthrough
CT: control target
= control target key end

     0   :  { %8 = vsyncpa [#allocation3], 0  ;;  %s445_s0 = inlined_call_operand.hbm [shape: f32[32,256], index: 0, kind: input, shape index: {}]   ;;  %s446_s1 = inlined_call_operand.hbm [shape: f32[256,128], index: 1, kind: input, shape index: {}]   ;;  %s447_s2 = inlined_call_operand.vmem [shape: f32[1,128], index: 2, kind: input, shape index: {}]   ;;  %s448_s3 = inlined_call_operand.hbm [shape: f32[32,128], index: 3, kind: output, shape index: {}]  }
   0x1   :  { %9 = vsyncpa [#allocation6], 0 }
   0x2   :  { %10 = vsyncpa [#allocation4], 0  ;;  %s373_s12 = smov [#allocation2]   ;;  %s301_s16 = scalar_lea.hbm %s445_s0, 1024 }
   0x3   :  { %s16_s13 = sshll.u32 %s373_s12, 4  ;;  %p302_p0 = scmp.ne.s32.totalorder %s445_s0, %s301_s16  ;;  %s17_s13 = int_to_ptr.vmem [resolvable:$true] %s16_s13 }
   0x4   :  { %p305_p1 = scmp.lt.u32.totalorder %s301_s16, %s445_s0 }
   0x6   :  { %p307_p2 = pnand %p305_p1, %p302_p0 }
   0x8   :  { %310 = shalt.err (!%p307_p2)
}
   0x9   :  { %s311_s21 = scalar_lea.vmem %s17_s13, 1024  ;;  %p316_p4 = scmp.lt.s32.totalorder %s17_s13, %s17_s13 }
   0xa   :  { %p312_p3 = scmp.ne.s32.totalorder %s17_s13, %s311_s21  ;;  %p317_p5 = scmp.lt.s32.totalorder %s311_s21, %s311_s21 }
   0xc   :  { %p318_p6 = por %p317_p5, %p316_p4 }
   0xe   :  { %p319_p7 = pnand %p318_p6, %p312_p3 }
  0x10   :  { %322 = shalt.err (!%p319_p7)
}
  0x11   :  { %s374_s22 = smov 256   ;;  %s375_s23 = smov 16  }
  0x12   :  { %22 = dma.hbm_to_vmem [thread:$0]  %s445_s0, 1024, %s17_s13, [#allocation3], %s374_s22, %s374_s22, %s375_s23  }
  0x13   :  { %s376_s26 = smov [#allocation5]   ;;  %s323_s30 = scalar_lea.hbm %s446_s1, 4096 }
  0x14   :  { %s28_s27 = sshll.u32 %s376_s26, 4  ;;  %p324_p8 = scmp.ne.s32.totalorder %s446_s1, %s323_s30  ;;  %s29_s27 = int_to_ptr.vmem [resolvable:$true] %s28_s27 }
  0x15   :  { %p327_p9 = scmp.lt.u32.totalorder %s323_s30, %s446_s1 }
  0x17   :  { %p329_p10 = pnand %p327_p9, %p324_p8 }
  0x19   :  { %332 = shalt.err (!%p329_p10)
}
  0x1a   :  { %s333_s8 = scalar_lea.vmem %s29_s27, 4096  ;;  %p338_p12 = scmp.lt.s32.totalorder %s29_s27, %s29_s27 }
  0x1b   :  { %p334_p11 = scmp.ne.s32.totalorder %s29_s27, %s333_s8  ;;  %p339_p13 = scmp.lt.s32.totalorder %s333_s8, %s333_s8 }
  0x1d   :  { %p340_p0 = por %p339_p13, %p338_p12 }
  0x1f   :  { %p341_p1 = pnand %p340_p0, %p334_p11 }
  0x21   :  { %344 = shalt.err (!%p341_p1)
}
  0x22   :  { %s377_s0 = smov 128   ;;  %s378_s9 = smov 8  }
  0x23   :  { %34 = dma.hbm_to_vmem [thread:$0]  %s446_s1, 4096, %s29_s27, [#allocation6], %s377_s0, %s377_s0, %s378_s9  }
  0x24   :  { %367 = dma.done.wait [#allocation3], 1024  }
  0x25   :  { %368 = vsyncadd [#allocation3], 4294966272 }
  0x26   :  { %369 = dma.done.wait [#allocation6], 4096  }
  0x27   :  { %370 = vsyncadd [#allocation6], 4294963200  ;;  %v67_v0 = vld [vmem:[#allocation5 + $0x80] sm:$0xff]  ;;  %v68_v1 = vld [vmem:[#allocation5 + $0x88] sm:$0xff]  ;;  %s379_s13 = smov [#allocation7]  }
  0x28   :  { %v51_v2 = vld [vmem:[#allocation5] sm:$0xff]  ;;  %v246_v3 = vpack.c.bf16 %v68_v1, %v67_v0  ;;  %v52_v4 = vld [vmem:[#allocation5 + $0x8] sm:$0xff]  ;;  %v69_v5 = vld [vmem:[#allocation5 + $0x90] sm:$0xff]  ;;  %s188_s14 = sshll.u32 %s379_s13, 4  ;;  %s189_s14 = int_to_ptr.vmem [resolvable:$true] %s188_s14 }
  0x29   :  { %v70_v6 = vld [vmem:[#allocation5 + $0x98] sm:$0xff]  ;;  %v248_v7 = vpack.c.bf16 %v52_v4, %v51_v2  ;;  %v53_v9 = vld [vmem:[#allocation5 + $0x10] sm:$0xff]  ;;  %v71_v11 = vld [vmem:[#allocation5 + $0xa0] sm:$0xff]  ;;  %p350_p3 = scmp.lt.s32.totalorder %s189_s14, %s189_s14 }
  0x2a   :  { %v250_v8 = vpack.c.bf16 %v70_v6, %v69_v5  ;;  %v54_v10 = vld [vmem:[#allocation5 + $0x18] sm:$0xff]  ;;  %247 = vmatprep.subr.bf16.mxu0 %v246_v3  ;;  %278 = vmatprep.subr.bf16.mxu1 %v246_v3  ;;  %v72_v12 = vld [vmem:[#allocation5 + $0xa8] sm:$0xff]  ;;  %v55_v15 = vld [vmem:[#allocation5 + $0x20] sm:$0xff] }
  0x2b   :  { %249 = vmatpush3.bf16.msra.mxu0 %v248_v7  ;;  %286 = vmatpush3.bf16.msra.mxu1 %v248_v7  ;;  %v252_v13 = vpack.c.bf16 %v54_v10, %v53_v9  ;;  %v254_v14 = vpack.c.bf16 %v72_v12, %v71_v11  ;;  %v56_v16 = vld [vmem:[#allocation5 + $0x28] sm:$0xff]  ;;  %v73_v17 = vld [vmem:[#allocation5 + $0xb0] sm:$0xff]  ;;  %v74_v18 = vld [vmem:[#allocation5 + $0xb8] sm:$0xff] }
  0x2c   :  { %251 = vmatprep.subr.bf16.mxu0 %v250_v8  ;;  %279 = vmatprep.subr.bf16.mxu1 %v250_v8  ;;  %v256_v19 = vpack.c.bf16 %v56_v16, %v55_v15  ;;  %v258_v20 = vpack.c.bf16 %v74_v18, %v73_v17  ;;  %v57_v21 = vld [vmem:[#allocation5 + $0x30] sm:$0xff]  ;;  %v58_v22 = vld [vmem:[#allocation5 + $0x38] sm:$0xff]  ;;  %v75_v23 = vld [vmem:[#allocation5 + $0xc0] sm:$0xff] }
  0x2d   :  { %v76_v24 = vld [vmem:[#allocation5 + $0xc8] sm:$0xff]  ;;  %v260_v27 = vpack.c.bf16 %v58_v22, %v57_v21  ;;  %v59_v29 = vld [vmem:[#allocation5 + $0x40] sm:$0xff]  ;;  %v77_v31 = vld [vmem:[#allocation5 + $0xd0] sm:$0xff] }
  0x2e   :  { %v44_v25 = vld [vmem:[#allocation2 + $0x8] sm:$0xff]  ;;  %v262_v28 = vpack.c.bf16 %v76_v24, %v75_v23  ;;  %v78_v32 = vld [vmem:[#allocation5 + $0xd8] sm:$0xff]  ;;  %v61_v35 = vld [vmem:[#allocation5 + $0x50] sm:$0xff] }
  0x2f   :  { %253 = vmatpush3.bf16.msra.mxu0 %v252_v13  ;;  %287 = vmatpush3.bf16.msra.mxu1 %v252_v13  ;;  %v48_v26 = vld [vmem:[#allocation2 + $0x28] sm:$0xff]  ;;  %v266_v34 = vpack.c.bf16 %v78_v32, %v77_v31  ;;  %v62_v36 = vld [vmem:[#allocation5 + $0x58] sm:$0xff]  ;;  %v79_v37 = vld [vmem:[#allocation5 + $0xe0] sm:$0xff] }
  0x30   :  { %255 = vmatprep.subr.bf16.mxu0 %v254_v14  ;;  %280 = vmatprep.subr.bf16.mxu1 %v254_v14  ;;  %v60_v30 = vld [vmem:[#allocation5 + $0x48] sm:$0xff]  ;;  %v268_v39 = vpack.c.bf16 %v62_v36, %v61_v35  ;;  %v63_v41 = vld [vmem:[#allocation5 + $0x60] sm:$0xff]  ;;  %v81_v43 = vld [vmem:[#allocation5 + $0xf0] sm:$0xff] }
  0x31   :  { %154 = vmatprep.mubr.f32.mxu0 %v44_v25  ;;  %164 = vmatprep.mubr.f32.mxu1 %v48_v26  ;;  %v264_v33 = vpack.c.bf16 %v60_v30, %v59_v29  ;;  %v80_v38 = vld [vmem:[#allocation5 + $0xe8] sm:$0xff]  ;;  %v82_v44 = vld [vmem:[#allocation5 + $0xf8] sm:$0xff]  ;;  %v65_v47 = vld [vmem:[#allocation5 + $0x70] sm:$0xff] }
  0x32   :  { %v270_v40 = vpack.c.bf16 %v80_v38, %v79_v37  ;;  %v64_v42 = vld [vmem:[#allocation5 + $0x68] sm:$0xff]  ;;  %v274_v46 = vpack.c.bf16 %v82_v44, %v81_v43  ;;  %v66_v48 = vld [vmem:[#allocation5 + $0x78] sm:$0xff]  ;;  %v43_v50 = vld [vmem:[#allocation2] sm:$0xff] }
  0x33   :  { %257 = vmatpush3.bf16.msra.mxu0 %v256_v19  ;;  %288 = vmatpush3.bf16.msra.mxu1 %v256_v19  ;;  %v272_v45 = vpack.c.bf16 %v64_v42, %v63_v41  ;;  %v276_v49 = vpack.c.bf16 %v66_v48, %v65_v47  ;;  %v47_v51 = vld [vmem:[#allocation2 + $0x20] sm:$0xff]  ;;  %v46_v52 = vld [vmem:[#allocation2 + $0x18] sm:$0xff]  ;;  %v45_v54 = vld [vmem:[#allocation2 + $0x10] sm:$0xff] }
  0x34   :  { %259 = vmatprep.subr.bf16.mxu0 %v258_v20  ;;  %281 = vmatprep.subr.bf16.mxu1 %v258_v20  ;;  %v50_v53 = vld [vmem:[#allocation2 + $0x38] sm:$0xff]  ;;  %v49_v55 = vld [vmem:[#allocation2 + $0x30] sm:$0xff]  ;;  %v201_v58 = vld [vmem:[%s447_s2] ss:$0 sm:$0xff]  ;;  %s345_s2 = scalar_lea.vmem %s189_s14, 512 }
  0x35   :  { %p346_p2 = scmp.ne.s32.totalorder %s189_s14, %s345_s2  ;;  %p351_p4 = scmp.lt.s32.totalorder %s345_s2, %s345_s2 }
  0x37   :  { %261 = vmatpush3.bf16.msra.mxu0 %v260_v27  ;;  %289 = vmatpush3.bf16.msra.mxu1 %v260_v27  ;;  %p352_p5 = por %p351_p4, %p350_p3 }
  0x38   :  { %263 = vmatprep.subr.bf16.mxu0 %v262_v28  ;;  %282 = vmatprep.subr.bf16.mxu1 %v262_v28 }
  0x39   :  { %p353_p6 = pnand %p352_p5, %p346_p2 }
  0x3b   :  { %265 = vmatpush3.bf16.msra.mxu0 %v264_v33  ;;  %290 = vmatpush3.bf16.msra.mxu1 %v264_v33 }
  0x3c   :  { %267 = vmatprep.subr.bf16.mxu0 %v266_v34  ;;  %283 = vmatprep.subr.bf16.mxu1 %v266_v34 }
  0x3f   :  { %269 = vmatpush3.bf16.msra.mxu0 %v268_v39  ;;  %291 = vmatpush3.bf16.msra.mxu1 %v268_v39 }
  0x40   :  { %271 = vmatprep.subr.bf16.mxu0 %v270_v40  ;;  %284 = vmatprep.subr.bf16.mxu1 %v270_v40 }
  0x43   :  { %273 = vmatpush3.bf16.msra.mxu0 %v272_v45  ;;  %292 = vmatpush3.bf16.msra.mxu1 %v272_v45 }
  0x44   :  { %275 = vmatprep.subr.bf16.mxu0 %v274_v46  ;;  %285 = vmatprep.subr.bf16.mxu1 %v274_v46 }
  0x47   :  { %277 = vmatpush3.bf16.msra.mxu0 %v276_v49  ;;  %293 = vmatpush3.bf16.msra.mxu1 %v276_v49 }
  0x4a   :  { %155 = vmatmul.mubr.f32.vlgmr.msra.gmra.mrb[0].mxu0 %v43_v50  ;;  %165 = vmatmul.mubr.f32.vlgmr.msra.gmra.mrb[0].mxu1 %v47_v51 }
  0x4b   :  { %159 = vmatprep.mubr.f32.mxu0 %v46_v52  ;;  %169 = vmatprep.mubr.f32.mxu1 %v50_v53 }
  0x4e   :  { %160 = vmatmul.mubr.f32.gmra.mrb[2].mxu0 %v45_v54  ;;  %170 = vmatmul.mubr.f32.gmra.mrb[2].mxu1 %v49_v55 }
 0x11d   :  { %v234_v56 = vpop.f32.mrb[0].mxu0  ;;  %v240_v57 = vpop.f32.mrb[0].mxu1 }
 0x11e   :  { %v235_v59 = vpop.f32.mrb[1].mxu0  ;;  %v241_v60 = vpop.f32.mrb[1].mxu1 }
 0x11f   :  { %v236_v61 = vadd.f32 %v235_v59, %v234_v56  ;;  %v242_v62 = vadd.f32 %v241_v60, %v240_v57 }
 0x121   :  { %v157_v63 = vadd.f32 %v236_v61, %v201_v58  ;;  %v167_v0 = vadd.f32 %v242_v62, %v201_v58  ;;  %v237_v1 = vpop.f32.mrb[2].mxu0  ;;  %v243_v2 = vpop.f32.mrb[2].mxu1 }
 0x122   :  { %v238_v3 = vpop.f32.mrb[3].mxu0  ;;  %v244_v4 = vpop.f32.mrb[3].mxu1 }
 0x123   :  { %v175_v5 = vmax.f32 %v157_v63, 0.0  ;;  %v177_v6 = vmax.f32 %v167_v0, 0.0  ;;  %v239_v7 = vadd.f32 %v238_v3, %v237_v1  ;;  %v245_v8 = vadd.f32 %v244_v4, %v243_v2 }
 0x125   :  { %179 = vst [vmem:[#allocation7] sm:$0xff] %v175_v5  ;;  %181 = vst [vmem:[#allocation7 + $0x10] sm:$0xff] %v177_v6  ;;  %v162_v9 = vadd.f32 %v239_v7, %v201_v58  ;;  %v172_v10 = vadd.f32 %v245_v8, %v201_v58 }
 0x127   :  { %v176_v11 = vmax.f32 %v162_v9, 0.0  ;;  %v178_v12 = vmax.f32 %v172_v10, 0.0 }
 0x129   :  { %180 = vst [vmem:[#allocation7 + $0x8] sm:$0xff] %v176_v11  ;;  %182 = vst [vmem:[#allocation7 + $0x18] sm:$0xff] %v178_v12 }
 0x12a   :  { %356 = shalt.err (!%p353_p6)
}
 0x12b   :  { %s357_s17 = scalar_lea.hbm %s448_s3, 512 }
 0x12c   :  { %p358_p7 = scmp.ne.s32.totalorder %s448_s3, %s357_s17  ;;  %p361_p8 = scmp.lt.u32.totalorder %s357_s17, %s448_s3 }
 0x12e   :  { %p363_p9 = pnand %p361_p8, %p358_p7 }
 0x130   :  { %366 = shalt.err (!%p363_p9)
}
 0x131   :  { %194 = dma.vmem_to_hbm [thread:$0]  %s189_s14, 512, %s448_s3, [#allocation4], %s377_s0, %s377_s0, %s378_s9  }
 0x132   :  { %371 = dma.done.wait [#allocation4], 512  }
 0x133   :  { %372 = vsyncadd [#allocation4], 4294966784 }
 0x134   :  { %198 = vsyncpa [#allocation3], 1 }
 0x135   :  { %199 = vsyncpa [#allocation6], 1 }
 0x136   :  { %200 = vsyncpa [#allocation4], 1 }

</bundles_post_ra>
